<compile_context>
chip_gen: v5e
topology: v5e:2x2
jax: 0.10.0
libtpu: 0.0.40
codegen_flags: <defaults>
</compile_context>

<pallas_src>
import jax
import jax.numpy as jnp
from jax import lax
from jax.experimental import pallas as pl
from jax.experimental.pallas import tpu as pltpu


def _round_up(x, m):
    return ((x + m - 1) // m) * m


def ffn_kernel(x_ref, w1_ref, b1_ref, w2_ref, b2_ref, o_ref):
    # x:  [tn, dm]        w1: [dm, dff_p]   b1: [1, dff_p]   ([in, out] layout)
    # w2: [dff_p, dm]     b2: [1, dm]       o:  [tn, dm]
    x = x_ref[...].astype(w1_ref.dtype)      # cast MXU input on the VPU (cheap)

    # h = relu(x @ W1 + b1): canonical contraction, f32 accumulation on the MXU.
    h = lax.dot_general(x, w1_ref[...], (((1,), (0,)), ((), ())),
                        preferred_element_type=jnp.float32)
    h = jnp.maximum(h + b1_ref[...], 0.0)    # bias / ReLU in f32 (free VPU slots)

    # Eval-mode dropout == identity (see TODO at top for training mode).

    # y = h @ W2 + b2 (h cast back to the weight compute dtype for the MXU).
    y = lax.dot_general(h.astype(w2_ref.dtype), w2_ref[...], (((1,), (0,)), ((), ())),
                        preferred_element_type=jnp.float32)
    o_ref[...] = (y + b2_ref[...]).astype(o_ref.dtype)


def prepare_ffn_params(w1, b1, w2, b2, *, compute_dtype=jnp.bfloat16):
    """One-time (init-time) parameter prep -- hoisted out of the hot path.

    nn.Linear layout in:  w1 [d_ff, d_model], b1 [d_ff], w2 [d_model, d_ff], b2 [d_model]
    Kernel layout out:    w1t [d_model, dff_p], b1r [1, dff_p],
                          w2t [dff_p, d_model], b2r [1, d_model]
    d_ff is padded to a multiple of 128 (lane width); the zero-padded columns of
    w1t/b1r and zero rows of w2t are mathematically neutral. Weights are stored
    in compute_dtype (default bf16) for the MXU; biases stay f32.
    """
    d_ff, d_model = w1.shape
    dff_p = _round_up(d_ff, 128)
    w1t = jnp.pad(w1.T, ((0, 0), (0, dff_p - d_ff))).astype(compute_dtype)
    w2t = jnp.pad(w2.T, ((0, dff_p - d_ff), (0, 0))).astype(compute_dtype)
    b1r = jnp.pad(b1, (0, dff_p - d_ff)).reshape(1, dff_p).astype(jnp.float32)
    b2r = jnp.reshape(b2, (1, d_model)).astype(jnp.float32)
    return w1t, b1r, w2t, b2r


def feed_forward(x, w1t, b1r, w2t, b2r, *, block_n=512,
                 vmem_budget_bytes=48 * 1024 * 1024):
    """FeedForward forward pass on prepared params (see prepare_ffn_params).

    x: [N, d_model]; output has the same shape/dtype as x.
    """
    n, d_model = x.shape
    dm_w, dff_p = w1t.shape
    assert dm_w == d_model and w2t.shape == (dff_p, d_model)
    out_dtype = x.dtype

    # --- token-tile sizing against an explicit VMEM budget --------------------
    x_bytes = jnp.dtype(x.dtype).itemsize
    o_bytes = jnp.dtype(out_dtype).itemsize
    w_bytes = jnp.dtype(w1t.dtype).itemsize
    # Resident (single-buffered) weights + f32 biases.
    weight_bytes = (w1t.size + w2t.size) * w_bytes + (b1r.size + b2r.size) * 4
    # Per token row: double-buffered x and o tiles, the [tn, dff_p] f32
    # intermediate h, and its transient compute-dtype copy fed to matmul #2.
    per_row = d_model * (2 * x_bytes + 2 * o_bytes) + dff_p * (4 + w_bytes)
    avail = max(vmem_budget_bytes - weight_bytes, 8 * per_row)
    tn_cap = max(8, (avail // per_row) // 8 * 8)
    tn = int(min(block_n, tn_cap, _round_up(n, 8)))
    grid = (pl.cdiv(n, tn),)

    # Scoped-VMEM request: actual buffer bytes + ~25% headroom, clamped so we
    # never ask for all of a v7x TensorCore's 64 MiB physical VMEM.
    needed = weight_bytes + tn * per_row
    vmem_limit = int(min(max(needed + needed // 4 + (4 << 20), 32 << 20), 56 << 20))

    invariant = dict(pipeline_mode=pl.Buffered(1))  # single-buffer resident operands

    return pl.pallas_call(
        ffn_kernel,
        out_shape=jax.ShapeDtypeStruct((n, d_model), out_dtype),
        grid_spec=pltpu.PrefetchScalarGridSpec(
            num_scalar_prefetch=0,
            grid=grid,
            in_specs=[
                # Activations stream per token tile (double-buffered by Pallas).
                pl.BlockSpec((tn, d_model), lambda i: (i, 0)),
                # Weights / biases: constant index_map -> resident, single-buffered.
                pl.BlockSpec((d_model, dff_p), lambda i: (0, 0), **invariant),
                pl.BlockSpec((1, dff_p), lambda i: (0, 0), **invariant),
                pl.BlockSpec((dff_p, d_model), lambda i: (0, 0), **invariant),
                pl.BlockSpec((1, d_model), lambda i: (0, 0), **invariant),
            ],
            out_specs=pl.BlockSpec((tn, d_model), lambda i: (i, 0)),
        ),
        compiler_params=pltpu.CompilerParams(
            # Token axis is embarrassingly parallel -> megacore sharding on v7x
            # (keep >= 2 tiles per core for real workloads).
            dimension_semantics=("parallel",),
            vmem_limit_bytes=vmem_limit,
        ),
    )(x, w1t, b1r, w2t, b2r)


def feed_forward_ref(x, w1, b1, w2, b2):
    h = jnp.maximum(x @ w1.T + b1, 0.0)
    return h @ w2.T + b2


if __name__ == "__main__":
    # Small shapes consistent with the module: tokens = batch*seq, d_model=16, d_ff=32.
    batch, seq, d_model, d_ff = 2, 8, 16, 32
    key = jax.random.PRNGKey(0)
    kx, k1, k2, k3, k4 = jax.random.split(key, 5)

    x = jax.random.normal(kx, (batch * seq, d_model), dtype=jnp.float32)
    # Deterministic synthetic parameters (nn.Linear layout: [out, in] + [out]).
    w1 = jax.random.normal(k1, (d_ff, d_model), dtype=jnp.float32) * 0.1
    b1 = jax.random.normal(k2, (d_ff,), dtype=jnp.float32) * 0.1
    w2 = jax.random.normal(k3, (d_model, d_ff), dtype=jnp.float32) * 0.1
    b2 = jax.random.normal(k4, (d_model,), dtype=jnp.float32) * 0.1

    ref = feed_forward_ref(x, w1, b1, w2, b2)

    # Exact-precision path (f32 MXU inputs) to validate the math tightly.
    params_f32 = prepare_ffn_params(w1, b1, w2, b2, compute_dtype=jnp.float32)
    out_f32 = jax.block_until_ready(feed_forward(x, *params_f32))
    assert out_f32.shape == (batch * seq, d_model)
    assert out_f32.dtype == x.dtype
    assert jnp.allclose(out_f32, ref, atol=1e-5, rtol=1e-5), "f32 mismatch vs reference"

    # Production default: bf16 MXU inputs, f32 accumulate (looser tolerance).
    params_bf16 = prepare_ffn_params(w1, b1, w2, b2)
    out_bf16 = jax.block_until_ready(feed_forward(x, *params_bf16))
    assert jnp.allclose(out_bf16, ref, atol=5e-2, rtol=5e-2), "bf16 mismatch vs reference"

    print("KERNEL_OK")
</pallas_src>

<mosaic_0001>
module attributes {stable_mosaic.version = 11 : i64} {
  func.func @ffn_kernel(%arg0: i32, %arg1: memref<16x16xf32, #tpu.memory_space<vmem>>, %arg2: memref<16x128xf32, #tpu.memory_space<vmem>>, %arg3: memref<1x128xf32, #tpu.memory_space<vmem>>, %arg4: memref<128x16xf32, #tpu.memory_space<vmem>>, %arg5: memref<1x16xf32, #tpu.memory_space<vmem>>, %arg6: memref<16x16xf32, #tpu.memory_space<vmem>>) attributes {dimension_semantics = [#tpu.dimension_semantics<parallel>], iteration_bounds = array<i64: 1>, scalar_prefetch = 0 : i64, scratch_operands = 0 : i64, tpu.core_type = #tpu.core_type<tc>, window_params = [{transform_indices = @transform_0, window_bounds = array<i64: 16, 16>}, {pipeline_mode = #tpu.pipeline_mode<synchronous>, transform_indices = @transform_1, window_bounds = array<i64: 16, 128>}, {pipeline_mode = #tpu.pipeline_mode<synchronous>, transform_indices = @transform_2, window_bounds = array<i64: 1, 128>}, {pipeline_mode = #tpu.pipeline_mode<synchronous>, transform_indices = @transform_3, window_bounds = array<i64: 128, 16>}, {pipeline_mode = #tpu.pipeline_mode<synchronous>, transform_indices = @transform_4, window_bounds = array<i64: 1, 16>}, {transform_indices = @transform_5, window_bounds = array<i64: 16, 16>}]} {
    %c0 = arith.constant 0 : index
    %c0_0 = arith.constant 0 : index
    %0 = vector.load %arg1[%c0, %c0_0] : memref<16x16xf32, #tpu.memory_space<vmem>>, vector<16x16xf32>
    %c0_1 = arith.constant 0 : index
    %c0_2 = arith.constant 0 : index
    %1 = vector.load %arg2[%c0_1, %c0_2] : memref<16x128xf32, #tpu.memory_space<vmem>>, vector<16x128xf32>
    %cst = arith.constant dense<0.000000e+00> : vector<16x128xf32>
    %2 = tpu.matmul %0, %1, %cst {dimension_numbers = #tpu.dot_dimension_numbers<[1], [0], [0], [1], [0, 0, 1, 1], [], []>} : vector<16x16xf32>, vector<16x128xf32>, vector<16x128xf32> -> vector<16x128xf32>
    %c0_3 = arith.constant 0 : index
    %c0_4 = arith.constant 0 : index
    %3 = vector.load %arg3[%c0_3, %c0_4] : memref<1x128xf32, #tpu.memory_space<vmem>>, vector<1x128xf32>
    %4 = vector.broadcast %3 : vector<1x128xf32> to vector<16x128xf32>
    %5 = arith.addf %2, %4 : vector<16x128xf32>
    %cst_5 = arith.constant 0.000000e+00 : f32
    %6 = vector.broadcast %cst_5 : f32 to vector<16x128xf32>
    %7 = arith.maximumf %5, %6 : vector<16x128xf32>
    %c0_6 = arith.constant 0 : index
    %c0_7 = arith.constant 0 : index
    %8 = vector.load %arg4[%c0_6, %c0_7] : memref<128x16xf32, #tpu.memory_space<vmem>>, vector<128x16xf32>
    %cst_8 = arith.constant dense<0.000000e+00> : vector<16x16xf32>
    %9 = tpu.matmul %7, %8, %cst_8 {dimension_numbers = #tpu.dot_dimension_numbers<[1], [0], [0], [1], [0, 0, 1, 1], [], []>} : vector<16x128xf32>, vector<128x16xf32>, vector<16x16xf32> -> vector<16x16xf32>
    %c0_9 = arith.constant 0 : index
    %c0_10 = arith.constant 0 : index
    %10 = vector.load %arg5[%c0_9, %c0_10] : memref<1x16xf32, #tpu.memory_space<vmem>>, vector<1x16xf32>
    %11 = vector.broadcast %10 : vector<1x16xf32> to vector<16x16xf32>
    %12 = arith.addf %9, %11 : vector<16x16xf32>
    %c0_11 = arith.constant 0 : index
    %c0_12 = arith.constant 0 : index
    %13 = vector.load %arg6[%c0_11, %c0_12] : memref<16x16xf32, #tpu.memory_space<vmem>>, vector<16x16xf32>
    tpu.vector_store %arg6[%c0_11, %c0_12], %12 {strides = array<i32>} : memref<16x16xf32, #tpu.memory_space<vmem>>, vector<16x16xf32>,
    return
  }
  func.func @transform_0(%arg0: i32) -> (i32, i32) {
    %c0_i32 = arith.constant 0 : i32
    %c0_i32_0 = arith.constant 0 : i32
    return %arg0, %c0_i32 : i32, i32
  }
  func.func @transform_1(%arg0: i32) -> (i32, i32) {
    %c0_i32 = arith.constant 0 : i32
    %c0_i32_0 = arith.constant 0 : i32
    %c0_i32_1 = arith.constant 0 : i32
    return %c0_i32, %c0_i32_0 : i32, i32
  }
  func.func @transform_2(%arg0: i32) -> (i32, i32) {
    %c0_i32 = arith.constant 0 : i32
    %c0_i32_0 = arith.constant 0 : i32
    %c0_i32_1 = arith.constant 0 : i32
    return %c0_i32, %c0_i32_0 : i32, i32
  }
  func.func @transform_3(%arg0: i32) -> (i32, i32) {
    %c0_i32 = arith.constant 0 : i32
    %c0_i32_0 = arith.constant 0 : i32
    %c0_i32_1 = arith.constant 0 : i32
    return %c0_i32, %c0_i32_0 : i32, i32
  }
  func.func @transform_4(%arg0: i32) -> (i32, i32) {
    %c0_i32 = arith.constant 0 : i32
    %c0_i32_0 = arith.constant 0 : i32
    %c0_i32_1 = arith.constant 0 : i32
    return %c0_i32, %c0_i32_0 : i32, i32
  }
  func.func @transform_5(%arg0: i32) -> (i32, i32) {
    %c0_i32 = arith.constant 0 : i32
    %c0_i32_0 = arith.constant 0 : i32
    return %arg0, %c0_i32 : i32, i32
  }
}

</mosaic_0001>

<bundles_post_ra>
// kernel: tpu_custom_call.1
= control target key start
LH: loop header
LB: loop body
LE: loop exit
PB: predicated region body
PF: predicated region fallthrough
CT: control target
= control target key end

     0   :  { %vm29_vm0 = vcmask 130048   ;;  %s279_s0 = inlined_call_operand.vmem [shape: f32[16,16], index: 0, kind: input, shape index: {}]   ;;  %s280_s1 = inlined_call_operand.vmem [shape: f32[16,128], index: 1, kind: input, shape index: {}]   ;;  %s281_s2 = inlined_call_operand.vmem [shape: f32[1,128], index: 2, kind: input, shape index: {}]   ;;  %s282_s3 = inlined_call_operand.vmem [shape: f32[128,16], index: 3, kind: input, shape index: {}]   ;;  %s283_s4 = inlined_call_operand.vmem [shape: f32[1,16], index: 4, kind: input, shape index: {}]   ;;  %s284_s5 = inlined_call_operand.hbm [shape: f32[16,16], index: 5, kind: output, shape index: {}]  }
   0x1   :  { %v24_v0 = vld [vmem:[%s280_s1 + $0x8] sm:$0xff]  ;;  %v23_v1 = vld [vmem:[%s280_s1] sm:$0xff]  ;;  %v76_v3 = vld [vmem:[%s282_s3 + $0x78] sm:$0xff] }
   0x2   :  { %50 = vmatpush.msra.mxu0 %v24_v0  ;;  %v21_v2 = vld [vmem:[%s279_s0] sm:$0xff]  ;;  %v75_v4 = vld [vmem:[%s282_s3 + $0x70] sm:$0xff]  ;;  %81 = vmatpush.msra.mxu1 %v76_v3  ;;  %v74_v5 = vld [vmem:[%s282_s3 + $0x68] sm:$0xff] }
   0x3   :  { %126 = vmatpush.msra.mxu2 %v76_v3  ;;  %v73_v6 = vld [vmem:[%s282_s3 + $0x60] sm:$0xff] }
   0x4   :  { %51 = vmatpush.msra.mxu0 %v23_v1  ;;  %82 = vmatpush.msra.mxu1 %v75_v4 }
   0x5   :  { %124 = vmatmul.msk.f32.vlgmr.msra.gmra.mxu0 %vm29_vm0, %v21_v2  ;;  %127 = vmatpush.msra.mxu2 %v75_v4 }
   0x6   :  { %83 = vmatpush.msra.mxu1 %v74_v5 }
   0x7   :  { %10 = vsyncpa [#allocation3], 0  ;;  %v72_v7 = vld [vmem:[%s282_s3 + $0x58] sm:$0xff]  ;;  %128 = vmatpush.msra.mxu2 %v74_v5  ;;  %v22_v8 = vld [vmem:[%s279_s0 + $0x8] sm:$0xff]  ;;  %s112_s11 = sshll.u32 %s284_s5, 4  ;;  %s174_s12 = smov 128   ;;  %s113_s11 = int_to_ptr.hbm [resolvable:$true] %s112_s11 }
   0x8   :  { %84 = vmatpush.msra.mxu1 %v73_v6  ;;  %v71_v9 = vld [vmem:[%s282_s3 + $0x50] sm:$0xff]  ;;  %v70_v10 = vld [vmem:[%s282_s3 + $0x48] sm:$0xff]  ;;  %v69_v11 = vld [vmem:[%s282_s3 + $0x40] sm:$0xff]  ;;  %s175_s13 = smov 8  }
   0x9   :  { %129 = vmatpush.msra.mxu2 %v73_v6  ;;  %v68_v12 = vld [vmem:[%s282_s3 + $0x38] sm:$0xff]  ;;  %v67_v13 = vld [vmem:[%s282_s3 + $0x30] sm:$0xff]  ;;  %v66_v14 = vld [vmem:[%s282_s3 + $0x28] sm:$0xff] }
   0xa   :  { %85 = vmatpush.msra.mxu1 %v72_v7  ;;  %v65_v15 = vld [vmem:[%s282_s3 + $0x20] sm:$0xff]  ;;  %v64_v16 = vld [vmem:[%s282_s3 + $0x18] sm:$0xff]  ;;  %v63_v17 = vld [vmem:[%s282_s3 + $0x10] sm:$0xff] }
   0xb   :  { %130 = vmatpush.msra.mxu2 %v72_v7  ;;  %v62_v18 = vld [vmem:[%s282_s3 + $0x8] sm:$0xff]  ;;  %v61_v19 = vld [vmem:[%s282_s3] sm:$0xff]  ;;  %s173_s3 = smov [#allocation2]  }
   0xc   :  { %86 = vmatpush.msra.mxu1 %v71_v9  ;;  %v145_v20 = vld [vmem:[%s281_s2] ss:$0 sm:$0xff]  ;;  %s110_s9 = sshll.u32 %s173_s3, 4  ;;  %s111_s9 = int_to_ptr.vmem [resolvable:$true] %s110_s9 }
   0xd   :  { %125 = vmatmul.msk.f32.gmra.mxu0 %vm29_vm0, %v22_v8  ;;  %131 = vmatpush.msra.mxu2 %v71_v9  ;;  %v146_v27 = vld [vmem:[%s283_s4] ss:$0 sm:$0xff] }
   0xe   :  { %87 = vmatpush.msra.mxu1 %v70_v10 }
   0xf   :  { %132 = vmatpush.msra.mxu2 %v70_v10 }
  0x10   :  { %88 = vmatpush.msra.mxu1 %v69_v11 }
  0x11   :  { %133 = vmatpush.msra.mxu2 %v69_v11 }
  0x12   :  { %89 = vmatpush.msra.mxu1 %v68_v12 }
  0x13   :  { %134 = vmatpush.msra.mxu2 %v68_v12 }
  0x14   :  { %90 = vmatpush.msra.mxu1 %v67_v13 }
  0x15   :  { %135 = vmatpush.msra.mxu2 %v67_v13 }
  0x16   :  { %91 = vmatpush.msra.mxu1 %v66_v14 }
  0x17   :  { %136 = vmatpush.msra.mxu2 %v66_v14 }
  0x18   :  { %92 = vmatpush.msra.mxu1 %v65_v15 }
  0x19   :  { %137 = vmatpush.msra.mxu2 %v65_v15 }
  0x1a   :  { %93 = vmatpush.msra.mxu1 %v64_v16 }
  0x1b   :  { %138 = vmatpush.msra.mxu2 %v64_v16 }
  0x1c   :  { %94 = vmatpush.msra.mxu1 %v63_v17 }
  0x1d   :  { %139 = vmatpush.msra.mxu2 %v63_v17 }
  0x1e   :  { %95 = vmatpush.msra.mxu1 %v62_v18 }
  0x1f   :  { %140 = vmatpush.msra.mxu2 %v62_v18 }
  0x20   :  { %96 = vmatpush.msra.mxu1 %v61_v19 }
  0x21   :  { %141 = vmatpush.msra.mxu2 %v61_v19 }
  0x82   :  { %v53_v21 = vpop.f32.mrf.mxu0 }
  0x83   :  { %v54_v22 = vadd.f32 %v145_v20, %v53_v21 }
  0x85   :  { %v59_v23 = vmax.f32 %v54_v22, 0.0 }
  0x87   :  { %97 = vmatmul.f32.vlgmr.msra.gmra.mxu1 %v59_v23 }
  0x8a   :  { %v56_v24 = vpop.f32.mrf.mxu0 }
  0x8b   :  { %v57_v25 = vadd.f32 %v145_v20, %v56_v24 }
  0x8d   :  { %v60_v26 = vmax.f32 %v57_v25, 0.0 }
  0x8f   :  { %100 = vmatmul.f32.vlgmr.msra.gmra.mxu2 %v60_v26 }
 0x104   :  { %v98_v28 = vpop.f32.mrf.mxu1 }
 0x105   :  { %v99_v29 = vadd.f32 %v146_v27, %v98_v28 }
 0x107   :  { %104 = vst.msk [vmem:[#allocation2] sm:$0xff] %vm29_vm0, %v99_v29 }
 0x112   :  { %v101_v30 = vpop.f32.mrf.mxu2 }
 0x113   :  { %v102_v31 = vadd.f32 %v146_v27, %v101_v30 }
 0x115   :  { %105 = vst.msk [vmem:[#allocation2 + $0x8] sm:$0xff] %vm29_vm0, %v102_v31 }
 0x116   :  { %118 = dma.vmem_to_hbm [thread:$0]  %s111_s9, 256, %s113_s11, [#allocation3], %s174_s12, %s174_s12, %s175_s13  }
 0x117   :  { %171 = dma.done.wait [#allocation3], 256  }
 0x118   :  { %172 = vsyncadd [#allocation3], 4294967040 }
 0x119   :  { %123 = vsyncpa [#allocation3], 1 }

</bundles_post_ra>
